<compile_context>
chip_gen: v6e
topology: v6e:2x2x1
jax: 0.10.0
libtpu: 0.0.40
codegen_flags: <defaults>
</compile_context>

<pallas_src>
import functools
import math

import jax
import jax.numpy as jnp
from jax.experimental import pallas as pl
from jax.experimental.pallas import tpu as pltpu


def _erf_approx(x):
    """Abramowitz & Stegun 7.1.26 rational approximation, max abs err ~1.5e-7."""
    p = 0.3275911
    a1, a2, a3, a4, a5 = (0.254829592, -0.284496736, 1.421413741,
                          -1.453152027, 1.061405429)
    ax = jnp.abs(x)
    t = 1.0 / (1.0 + p * ax)
    poly = ((((a5 * t + a4) * t + a3) * t + a2) * t + a1) * t
    y = 1.0 - poly * jnp.exp(-ax * ax)
    return jnp.where(x < 0.0, -y, y)


def _gelu_exact(x):
    # nn.GELU() default (approximate='none'): 0.5*x*(1 + erf(x/sqrt(2)))
    return 0.5 * x * (1.0 + _erf_approx(x * (1.0 / math.sqrt(2.0))))


def _ffn_kernel(x_ref, w1_ref, att1_ref, b1_ref,
                w2t_ref, att2t_ref, b2_ref,
                wlt_ref, bl_ref, o_ref, *, block_b):
    # Grid-invariant operands (loaded once per step, resident tiny tiles).
    w1 = w1_ref[...]        # (L, L)   gcn1.weight
    att1 = att1_ref[...]    # (N, N)   gcn1.att
    b1 = b1_ref[...]        # (1, L)   gcn1.bias (broadcast over rows)
    w2t = w2t_ref[...]      # (N, N)   gcn2.weight^T
    att2t = att2t_ref[...]  # (L, L)   gcn2.att^T
    b2 = b2_ref[...]        # (N, 1)   gcn2.bias (broadcast over lanes)
    wlt = wlt_ref[...]      # (L, L)   linear.weight^T
    bl = bl_ref[...]        # (1, L)   linear.bias

    # Static unrolled loop over the batch elements of this block; each
    # iteration is a chain of dense 2-D MXU matmuls in (N, L) layout.
    for i in range(block_b):
        x = x_ref[i]                                                  # (N, L)

        # --- gcn1: att1 @ (x @ W1) + b1, then GELU ---------------------------
        t = jnp.dot(x, w1, preferred_element_type=jnp.float32)       # (N, L)
        t = jnp.dot(att1, t, preferred_element_type=jnp.float32)     # (N, L)
        z1 = _gelu_exact(t + b1)                                      # (N, L)

        # --- gcn2 with both permutes folded away -----------------------------
        # permute -> (att2 @ (z1.T @ W2) + b2) -> permute
        #   == W2.T @ (z1 @ att2.T) + b2[:, None]   (stays in (N, L) layout)
        u = jnp.dot(z1, att2t, preferred_element_type=jnp.float32)   # (N, L)
        u = jnp.dot(w2t, u, preferred_element_type=jnp.float32)      # (N, L)
        z2 = _gelu_exact(u + b2)                                      # (N, L)

        # --- final nn.Linear --------------------------------------------------
        y = jnp.dot(z2, wlt, preferred_element_type=jnp.float32) + bl
        o_ref[i] = y.astype(o_ref.dtype)


def _pick_block_b(B):
    # Several batch elements per step to amortize grid overhead, but keep the
    # parallel grid extent >= 2 when possible (two TensorCores on v7x).
    cand = max(1, min(4, B // 2))
    while B % cand:
        cand -= 1
    return cand


def ffn_forward(x, w1, att1, b1, w2, att2, b2, wl, bl, *, block_b=None):
    """FFN forward.

    x:    (B, n_pre, latent_dim)
    w1:   (latent_dim, latent_dim)   gcn1.weight  (in, out)
    att1: (n_pre, n_pre)             gcn1.att
    b1:   (latent_dim,)              gcn1.bias
    w2:   (n_pre, n_pre)             gcn2.weight  (in, out)
    att2: (latent_dim, latent_dim)   gcn2.att
    b2:   (n_pre,)                   gcn2.bias
    wl:   (latent_dim, latent_dim)   linear.weight (out, in) -- PyTorch Linear
    bl:   (latent_dim,)              linear.bias
    """
    x = x.astype(jnp.float32)        # GraphConvolution: input.to(torch.float32)
    B, N, L = x.shape
    if block_b is None:
        block_b = _pick_block_b(B)
    assert B % block_b == 0, "block_b must divide batch"

    # Fold the two permutes into the weights (free, done once on the host).
    w2t = w2.T                       # (N, N)
    att2t = att2.T                   # (L, L)
    wlt = wl.T                       # (L, L): y @ Wl.T
    b1_row = b1.reshape(1, L)
    b2_col = b2.reshape(N, 1)
    bl_row = bl.reshape(1, L)

    const2d = lambda b: (0, 0)
    kernel = functools.partial(_ffn_kernel, block_b=block_b)

    return pl.pallas_call(
        kernel,
        out_shape=jax.ShapeDtypeStruct((B, N, L), jnp.float32),
        grid_spec=pltpu.PrefetchScalarGridSpec(
            num_scalar_prefetch=0,
            grid=(B // block_b,),
            in_specs=[
                pl.BlockSpec((block_b, N, L), lambda b: (b, 0, 0)),  # x
                pl.BlockSpec((L, L), const2d),                       # W1
                pl.BlockSpec((N, N), const2d),                       # att1
                pl.BlockSpec((1, L), const2d),                       # b1
                pl.BlockSpec((N, N), const2d),                       # W2^T
                pl.BlockSpec((L, L), const2d),                       # att2^T
                pl.BlockSpec((N, 1), const2d),                       # b2 (col)
                pl.BlockSpec((L, L), const2d),                       # Wl^T
                pl.BlockSpec((1, L), const2d),                       # bl
            ],
            out_specs=pl.BlockSpec((block_b, N, L), lambda b: (b, 0, 0)),
        ),
        compiler_params=pltpu.CompilerParams(
            dimension_semantics=("parallel",)),
    )(x, w1, att1, b1_row, w2t, att2t, b2_col, wlt, bl_row)


def _reference(x, w1, att1, b1, w2, att2, b2, wl, bl):
    """Pure-JAX mirror of the PyTorch FFN.forward (eval mode)."""
    hp = jax.lax.Precision.HIGHEST
    x = x.astype(jnp.float32)

    def gelu(v):
        return jax.nn.gelu(v, approximate=False)   # exact erf GELU

    # gcn1
    s = jnp.matmul(x, w1, precision=hp)            # (B, N, L)
    y = jnp.matmul(att1, s, precision=hp) + b1     # (N,N) @ (B,N,L) -> (B,N,L)
    y = gelu(y)
    # permute
    y = jnp.transpose(y, (0, 2, 1))                # (B, L, N)
    # gcn2
    s = jnp.matmul(y, w2, precision=hp)            # (B, L, N)
    y = jnp.matmul(att2, s, precision=hp) + b2     # (L,L) @ (B,L,N) -> (B,L,N)
    y = gelu(y)
    # permute back
    y = jnp.transpose(y, (0, 2, 1))                # (B, N, L)
    # linear
    return jnp.matmul(y, wl.T, precision=hp) + bl


if __name__ == "__main__":
    B, N, L = 2, 20, 32        # batch, n_pre (node_n default 20), latent_dim
    key = jax.random.PRNGKey(0)
    ks = jax.random.split(key, 9)

    x = jax.random.normal(ks[0], (B, N, L), dtype=jnp.float32)
    w1 = 0.2 * jax.random.normal(ks[1], (L, L), dtype=jnp.float32)
    att1 = 0.2 * jax.random.normal(ks[2], (N, N), dtype=jnp.float32)
    b1 = 0.1 * jax.random.normal(ks[3], (L,), dtype=jnp.float32)
    w2 = 0.2 * jax.random.normal(ks[4], (N, N), dtype=jnp.float32)
    att2 = 0.2 * jax.random.normal(ks[5], (L, L), dtype=jnp.float32)
    b2 = 0.1 * jax.random.normal(ks[6], (N,), dtype=jnp.float32)
    wl = 0.2 * jax.random.normal(ks[7], (L, L), dtype=jnp.float32)   # (out, in)
    bl = 0.1 * jax.random.normal(ks[8], (L,), dtype=jnp.float32)

    out = ffn_forward(x, w1, att1, b1, w2, att2, b2, wl, bl)
    out = jax.block_until_ready(out)

    ref = _reference(x, w1, att1, b1, w2, att2, b2, wl, bl)
    assert out.shape == ref.shape, "shape mismatch vs reference"
    assert jnp.allclose(out, ref, atol=2e-4, rtol=2e-4), "mismatch vs reference"

    print("KERNEL_OK")
</pallas_src>

<mosaic_0001>
module attributes {stable_mosaic.version = 11 : i64} {
  func.func @_ffn_kernel(%arg0: i32, %arg1: memref<1x20x32xf32, #tpu.memory_space<vmem>>, %arg2: memref<32x32xf32, #tpu.memory_space<vmem>>, %arg3: memref<20x20xf32, #tpu.memory_space<vmem>>, %arg4: memref<1x32xf32, #tpu.memory_space<vmem>>, %arg5: memref<20x20xf32, #tpu.memory_space<vmem>>, %arg6: memref<32x32xf32, #tpu.memory_space<vmem>>, %arg7: memref<20x1xf32, #tpu.memory_space<vmem>>, %arg8: memref<32x32xf32, #tpu.memory_space<vmem>>, %arg9: memref<1x32xf32, #tpu.memory_space<vmem>>, %arg10: memref<1x20x32xf32, #tpu.memory_space<vmem>>) attributes {dimension_semantics = [#tpu.dimension_semantics<parallel>], iteration_bounds = array<i64: 2>, scalar_prefetch = 0 : i64, scratch_operands = 0 : i64, tpu.core_type = #tpu.core_type<tc>, window_params = [{transform_indices = @transform_0, window_bounds = array<i64: 1, 20, 32>}, {pipeline_mode = #tpu.pipeline_mode<synchronous>, transform_indices = @transform_1, window_bounds = array<i64: 32, 32>}, {pipeline_mode = #tpu.pipeline_mode<synchronous>, transform_indices = @transform_2, window_bounds = array<i64: 20, 20>}, {pipeline_mode = #tpu.pipeline_mode<synchronous>, transform_indices = @transform_3, window_bounds = array<i64: 1, 32>}, {pipeline_mode = #tpu.pipeline_mode<synchronous>, transform_indices = @transform_4, window_bounds = array<i64: 20, 20>}, {pipeline_mode = #tpu.pipeline_mode<synchronous>, transform_indices = @transform_5, window_bounds = array<i64: 32, 32>}, {pipeline_mode = #tpu.pipeline_mode<synchronous>, transform_indices = @transform_6, window_bounds = array<i64: 20, 1>}, {pipeline_mode = #tpu.pipeline_mode<synchronous>, transform_indices = @transform_7, window_bounds = array<i64: 32, 32>}, {pipeline_mode = #tpu.pipeline_mode<synchronous>, transform_indices = @transform_8, window_bounds = array<i64: 1, 32>}, {transform_indices = @transform_9, window_bounds = array<i64: 1, 20, 32>}]} {
    %c0 = arith.constant 0 : index
    %c0_0 = arith.constant 0 : index
    %0 = vector.load %arg2[%c0, %c0_0] : memref<32x32xf32, #tpu.memory_space<vmem>>, vector<32x32xf32>
    %c0_1 = arith.constant 0 : index
    %c0_2 = arith.constant 0 : index
    %1 = vector.load %arg3[%c0_1, %c0_2] : memref<20x20xf32, #tpu.memory_space<vmem>>, vector<20x20xf32>
    %c0_3 = arith.constant 0 : index
    %c0_4 = arith.constant 0 : index
    %2 = vector.load %arg4[%c0_3, %c0_4] : memref<1x32xf32, #tpu.memory_space<vmem>>, vector<1x32xf32>
    %c0_5 = arith.constant 0 : index
    %c0_6 = arith.constant 0 : index
    %3 = vector.load %arg5[%c0_5, %c0_6] : memref<20x20xf32, #tpu.memory_space<vmem>>, vector<20x20xf32>
    %c0_7 = arith.constant 0 : index
    %c0_8 = arith.constant 0 : index
    %4 = vector.load %arg6[%c0_7, %c0_8] : memref<32x32xf32, #tpu.memory_space<vmem>>, vector<32x32xf32>
    %c0_9 = arith.constant 0 : index
    %c0_10 = arith.constant 0 : index
    %5 = vector.load %arg7[%c0_9, %c0_10] : memref<20x1xf32, #tpu.memory_space<vmem>>, vector<20x1xf32>
    %c0_11 = arith.constant 0 : index
    %c0_12 = arith.constant 0 : index
    %6 = vector.load %arg8[%c0_11, %c0_12] : memref<32x32xf32, #tpu.memory_space<vmem>>, vector<32x32xf32>
    %c0_13 = arith.constant 0 : index
    %c0_14 = arith.constant 0 : index
    %7 = vector.load %arg9[%c0_13, %c0_14] : memref<1x32xf32, #tpu.memory_space<vmem>>, vector<1x32xf32>
    %c0_15 = arith.constant 0 : index
    %c0_16 = arith.constant 0 : index
    %c0_17 = arith.constant 0 : index
    %8 = vector.load %arg1[%c0_15, %c0_16, %c0_17] : memref<1x20x32xf32, #tpu.memory_space<vmem>>, vector<1x20x32xf32>
    %9 = vector.shape_cast %8 : vector<1x20x32xf32> to vector<20x32xf32>
    %cst = arith.constant dense<0.000000e+00> : vector<20x32xf32>
    %10 = tpu.matmul %9, %0, %cst {dimension_numbers = #tpu.dot_dimension_numbers<[1], [0], [0], [1], [0, 0, 1, 1], [], []>} : vector<20x32xf32>, vector<32x32xf32>, vector<20x32xf32> -> vector<20x32xf32>
    %cst_18 = arith.constant dense<0.000000e+00> : vector<20x32xf32>
    %11 = tpu.matmul %1, %10, %cst_18 {dimension_numbers = #tpu.dot_dimension_numbers<[1], [0], [0], [1], [0, 0, 1, 1], [], []>} : vector<20x20xf32>, vector<20x32xf32>, vector<20x32xf32> -> vector<20x32xf32>
    %12 = vector.broadcast %2 : vector<1x32xf32> to vector<20x32xf32>
    %13 = arith.addf %11, %12 : vector<20x32xf32>
    %cst_19 = arith.constant 5.000000e-01 : f32
    %14 = vector.broadcast %cst_19 : f32 to vector<20x32xf32>
    %15 = arith.mulf %14, %13 : vector<20x32xf32>
    %cst_20 = arith.constant 0.707106769 : f32
    %16 = vector.broadcast %cst_20 : f32 to vector<20x32xf32>
    %17 = arith.mulf %13, %16 : vector<20x32xf32>
    %18 = math.absf %17 : vector<20x32xf32>
    %cst_21 = arith.constant 0.327591091 : f32
    %19 = vector.broadcast %cst_21 : f32 to vector<20x32xf32>
    %20 = arith.mulf %19, %18 : vector<20x32xf32>
    %cst_22 = arith.constant 1.000000e+00 : f32
    %21 = vector.broadcast %cst_22 : f32 to vector<20x32xf32>
    %22 = arith.addf %21, %20 : vector<20x32xf32>
    %cst_23 = arith.constant 1.000000e+00 : f32
    %23 = vector.broadcast %cst_23 : f32 to vector<20x32xf32>
    %24 = arith.divf %23, %22 : vector<20x32xf32>
    %cst_24 = arith.constant 1.06140542 : f32
    %25 = vector.broadcast %cst_24 : f32 to vector<20x32xf32>
    %26 = arith.mulf %25, %24 : vector<20x32xf32>
    %cst_25 = arith.constant -1.45315206 : f32
    %27 = vector.broadcast %cst_25 : f32 to vector<20x32xf32>
    %28 = arith.addf %26, %27 : vector<20x32xf32>
    %29 = arith.mulf %28, %24 : vector<20x32xf32>
    %cst_26 = arith.constant 1.42141378 : f32
    %30 = vector.broadcast %cst_26 : f32 to vector<20x32xf32>
    %31 = arith.addf %29, %30 : vector<20x32xf32>
    %32 = arith.mulf %31, %24 : vector<20x32xf32>
    %cst_27 = arith.constant -0.284496725 : f32
    %33 = vector.broadcast %cst_27 : f32 to vector<20x32xf32>
    %34 = arith.addf %32, %33 : vector<20x32xf32>
    %35 = arith.mulf %34, %24 : vector<20x32xf32>
    %cst_28 = arith.constant 0.254829586 : f32
    %36 = vector.broadcast %cst_28 : f32 to vector<20x32xf32>
    %37 = arith.addf %35, %36 : vector<20x32xf32>
    %38 = arith.mulf %37, %24 : vector<20x32xf32>
    %cst_29 = arith.constant 0.000000e+00 : f32
    %39 = vector.broadcast %cst_29 : f32 to vector<20x32xf32>
    %40 = arith.subf %39, %18 : vector<20x32xf32>
    %41 = arith.mulf %40, %18 : vector<20x32xf32>
    %42 = math.exp %41 : vector<20x32xf32>
    %43 = arith.mulf %38, %42 : vector<20x32xf32>
    %cst_30 = arith.constant 1.000000e+00 : f32
    %44 = vector.broadcast %cst_30 : f32 to vector<20x32xf32>
    %45 = arith.subf %44, %43 : vector<20x32xf32>
    %cst_31 = arith.constant 0.000000e+00 : f32
    %46 = vector.broadcast %cst_31 : f32 to vector<20x32xf32>
    %47 = arith.cmpf olt, %17, %46 : vector<20x32xf32>
    %cst_32 = arith.constant 0.000000e+00 : f32
    %48 = vector.broadcast %cst_32 : f32 to vector<20x32xf32>
    %49 = arith.subf %48, %45 : vector<20x32xf32>
    %50 = arith.select %47, %49, %45 : vector<20x32xi1>, vector<20x32xf32>
    %cst_33 = arith.constant 1.000000e+00 : f32
    %51 = vector.broadcast %cst_33 : f32 to vector<20x32xf32>
    %52 = arith.addf %51, %50 : vector<20x32xf32>
    %53 = arith.mulf %15, %52 : vector<20x32xf32>
    %cst_34 = arith.constant dense<0.000000e+00> : vector<20x32xf32>
    %54 = tpu.matmul %53, %4, %cst_34 {dimension_numbers = #tpu.dot_dimension_numbers<[1], [0], [0], [1], [0, 0, 1, 1], [], []>} : vector<20x32xf32>, vector<32x32xf32>, vector<20x32xf32> -> vector<20x32xf32>
    %cst_35 = arith.constant dense<0.000000e+00> : vector<20x32xf32>
    %55 = tpu.matmul %3, %54, %cst_35 {dimension_numbers = #tpu.dot_dimension_numbers<[1], [0], [0], [1], [0, 0, 1, 1], [], []>} : vector<20x20xf32>, vector<20x32xf32>, vector<20x32xf32> -> vector<20x32xf32>
    %56 = vector.broadcast %5 : vector<20x1xf32> to vector<20x32xf32>
    %57 = arith.addf %55, %56 : vector<20x32xf32>
    %cst_36 = arith.constant 5.000000e-01 : f32
    %58 = vector.broadcast %cst_36 : f32 to vector<20x32xf32>
    %59 = arith.mulf %58, %57 : vector<20x32xf32>
    %cst_37 = arith.constant 0.707106769 : f32
    %60 = vector.broadcast %cst_37 : f32 to vector<20x32xf32>
    %61 = arith.mulf %57, %60 : vector<20x32xf32>
    %62 = math.absf %61 : vector<20x32xf32>
    %cst_38 = arith.constant 0.327591091 : f32
    %63 = vector.broadcast %cst_38 : f32 to vector<20x32xf32>
    %64 = arith.mulf %63, %62 : vector<20x32xf32>
    %cst_39 = arith.constant 1.000000e+00 : f32
    %65 = vector.broadcast %cst_39 : f32 to vector<20x32xf32>
    %66 = arith.addf %65, %64 : vector<20x32xf32>
    %cst_40 = arith.constant 1.000000e+00 : f32
    %67 = vector.broadcast %cst_40 : f32 to vector<20x32xf32>
    %68 = arith.divf %67, %66 : vector<20x32xf32>
    %cst_41 = arith.constant 1.06140542 : f32
    %69 = vector.broadcast %cst_41 : f32 to vector<20x32xf32>
    %70 = arith.mulf %69, %68 : vector<20x32xf32>
    %cst_42 = arith.constant -1.45315206 : f32
    %71 = vector.broadcast %cst_42 : f32 to vector<20x32xf32>
    %72 = arith.addf %70, %71 : vector<20x32xf32>
    %73 = arith.mulf %72, %68 : vector<20x32xf32>
    %cst_43 = arith.constant 1.42141378 : f32
    %74 = vector.broadcast %cst_43 : f32 to vector<20x32xf32>
    %75 = arith.addf %73, %74 : vector<20x32xf32>
    %76 = arith.mulf %75, %68 : vector<20x32xf32>
    %cst_44 = arith.constant -0.284496725 : f32
    %77 = vector.broadcast %cst_44 : f32 to vector<20x32xf32>
    %78 = arith.addf %76, %77 : vector<20x32xf32>
    %79 = arith.mulf %78, %68 : vector<20x32xf32>
    %cst_45 = arith.constant 0.254829586 : f32
    %80 = vector.broadcast %cst_45 : f32 to vector<20x32xf32>
    %81 = arith.addf %79, %80 : vector<20x32xf32>
    %82 = arith.mulf %81, %68 : vector<20x32xf32>
    %cst_46 = arith.constant 0.000000e+00 : f32
    %83 = vector.broadcast %cst_46 : f32 to vector<20x32xf32>
    %84 = arith.subf %83, %62 : vector<20x32xf32>
    %85 = arith.mulf %84, %62 : vector<20x32xf32>
    %86 = math.exp %85 : vector<20x32xf32>
    %87 = arith.mulf %82, %86 : vector<20x32xf32>
    %cst_47 = arith.constant 1.000000e+00 : f32
    %88 = vector.broadcast %cst_47 : f32 to vector<20x32xf32>
    %89 = arith.subf %88, %87 : vector<20x32xf32>
    %cst_48 = arith.constant 0.000000e+00 : f32
    %90 = vector.broadcast %cst_48 : f32 to vector<20x32xf32>
    %91 = arith.cmpf olt, %61, %90 : vector<20x32xf32>
    %cst_49 = arith.constant 0.000000e+00 : f32
    %92 = vector.broadcast %cst_49 : f32 to vector<20x32xf32>
    %93 = arith.subf %92, %89 : vector<20x32xf32>
    %94 = arith.select %91, %93, %89 : vector<20x32xi1>, vector<20x32xf32>
    %cst_50 = arith.constant 1.000000e+00 : f32
    %95 = vector.broadcast %cst_50 : f32 to vector<20x32xf32>
    %96 = arith.addf %95, %94 : vector<20x32xf32>
    %97 = arith.mulf %59, %96 : vector<20x32xf32>
    %cst_51 = arith.constant dense<0.000000e+00> : vector<20x32xf32>
    %98 = tpu.matmul %97, %6, %cst_51 {dimension_numbers = #tpu.dot_dimension_numbers<[1], [0], [0], [1], [0, 0, 1, 1], [], []>} : vector<20x32xf32>, vector<32x32xf32>, vector<20x32xf32> -> vector<20x32xf32>
    %99 = vector.broadcast %7 : vector<1x32xf32> to vector<20x32xf32>
    %100 = arith.addf %98, %99 : vector<20x32xf32>
    %c0_52 = arith.constant 0 : index
    %c0_53 = arith.constant 0 : index
    %c0_54 = arith.constant 0 : index
    %101 = vector.load %arg10[%c0_52, %c0_53, %c0_54] : memref<1x20x32xf32, #tpu.memory_space<vmem>>, vector<1x20x32xf32>
    %102 = vector.shape_cast %101 : vector<1x20x32xf32> to vector<20x32xf32>
    %103 = vector.shape_cast %100 : vector<20x32xf32> to vector<1x20x32xf32>
    tpu.vector_store %arg10[%c0_52, %c0_53, %c0_54], %103 {strides = array<i32>} : memref<1x20x32xf32, #tpu.memory_space<vmem>>, vector<1x20x32xf32>,
    return
  }
  func.func @transform_0(%arg0: i32) -> (i32, i32, i32) {
    %c0_i32 = arith.constant 0 : i32
    %c0_i32_0 = arith.constant 0 : i32
    %c0_i32_1 = arith.constant 0 : i32
    return %arg0, %c0_i32, %c0_i32_0 : i32, i32, i32
  }
  func.func @transform_1(%arg0: i32) -> (i32, i32) {
    %c0_i32 = arith.constant 0 : i32
    %c0_i32_0 = arith.constant 0 : i32
    %c0_i32_1 = arith.constant 0 : i32
    return %c0_i32, %c0_i32_0 : i32, i32
  }
  func.func @transform_2(%arg0: i32) -> (i32, i32) {
    %c0_i32 = arith.constant 0 : i32
    %c0_i32_0 = arith.constant 0 : i32
    %c0_i32_1 = arith.constant 0 : i32
    return %c0_i32, %c0_i32_0 : i32, i32
  }
  func.func @transform_3(%arg0: i32) -> (i32, i32) {
    %c0_i32 = arith.constant 0 : i32
    %c0_i32_0 = arith.constant 0 : i32
    %c0_i32_1 = arith.constant 0 : i32
    return %c0_i32, %c0_i32_0 : i32, i32
  }
  func.func @transform_4(%arg0: i32) -> (i32, i32) {
    %c0_i32 = arith.constant 0 : i32
    %c0_i32_0 = arith.constant 0 : i32
    %c0_i32_1 = arith.constant 0 : i32
    return %c0_i32, %c0_i32_0 : i32, i32
  }
  func.func @transform_5(%arg0: i32) -> (i32, i32) {
    %c0_i32 = arith.constant 0 : i32
    %c0_i32_0 = arith.constant 0 : i32
    %c0_i32_1 = arith.constant 0 : i32
    return %c0_i32, %c0_i32_0 : i32, i32
  }
  func.func @transform_6(%arg0: i32) -> (i32, i32) {
    %c0_i32 = arith.constant 0 : i32
    %c0_i32_0 = arith.constant 0 : i32
    %c0_i32_1 = arith.constant 0 : i32
    return %c0_i32, %c0_i32_0 : i32, i32
  }
  func.func @transform_7(%arg0: i32) -> (i32, i32) {
    %c0_i32 = arith.constant 0 : i32
    %c0_i32_0 = arith.constant 0 : i32
    %c0_i32_1 = arith.constant 0 : i32
    return %c0_i32, %c0_i32_0 : i32, i32
  }
  func.func @transform_8(%arg0: i32) -> (i32, i32) {
    %c0_i32 = arith.constant 0 : i32
    %c0_i32_0 = arith.constant 0 : i32
    %c0_i32_1 = arith.constant 0 : i32
    return %c0_i32, %c0_i32_0 : i32, i32
  }
  func.func @transform_9(%arg0: i32) -> (i32, i32, i32) {
    %c0_i32 = arith.constant 0 : i32
    %c0_i32_0 = arith.constant 0 : i32
    %c0_i32_1 = arith.constant 0 : i32
    return %arg0, %c0_i32, %c0_i32_0 : i32, i32, i32
  }
}

</mosaic_0001>

<bundles_post_ra>
// kernel: tpu_custom_call.1
= control target key start
LH: loop header
LB: loop body
LE: loop exit
PB: predicated region body
PF: predicated region fallthrough
CT: control target
= control target key end

     0   :  { %14 = vsyncpa [#allocation3], 0  ;;  %s1694_s0 = inlined_call_operand.vmem [shape: f32[2,20,32], index: 0, kind: input, shape index: {}]   ;;  %s1695_s1 = inlined_call_operand.vmem [shape: f32[32,32], index: 1, kind: input, shape index: {}]   ;;  %s1696_s2 = inlined_call_operand.hbm [shape: f32[20,20], index: 2, kind: input, shape index: {}]   ;;  %s1697_s3 = inlined_call_operand.hbm [shape: f32[1,32], index: 3, kind: input, shape index: {}]   ;;  %s1698_s4 = inlined_call_operand.vmem [shape: f32[20,20], index: 4, kind: input, shape index: {}]   ;;  %s1699_s5 = inlined_call_operand.vmem [shape: f32[32,32], index: 5, kind: input, shape index: {}]   ;;  %s1700_s6 = inlined_call_operand.vmem [shape: f32[20,1], index: 6, kind: input, shape index: {}]   ;;  %s1701_s7 = inlined_call_operand.vmem [shape: f32[32,32], index: 7, kind: input, shape index: {}]   ;;  %s1702_s8 = inlined_call_operand.vmem [shape: f32[1,32], index: 8, kind: input, shape index: {}]   ;;  %s1703_s9 = inlined_call_operand.vmem [shape: f32[2,20,32], index: 9, kind: output, shape index: {}]  }
   0x1   :  { %15 = vsyncpa [#allocation5], 0  ;;  %s1449_s30 = smov 0  }
   0x2 LB: > { %s1455_s10 = sadd.s32 4294967295, %s1390_s30   ;;  %p1113_p0 = scmp.ge.s32.totalorder %s1390_s30, 1  ;;  %s1390_s30 = sphi %s1449_s30, %s21_s30  }
   0x3   : > { %p246_p1 = scmp.lt.s32.totalorder %s1390_s30, 3  ;;  %s1392_s11 = smov [#allocation2]  }
   0x4   : > { %s261_s12 = sshll.u32 %s1392_s11, 4  ;;  %p1279_p3 = scmp.eq.s32.totalorder %s1455_s10, 0  ;;  %s262_s12 = int_to_ptr.vmem [resolvable:$true] %s261_s12 }
   0x5   : > { %p1459_p2 = pnand %p1113_p0, %p246_p1  ;;  %s1393_s14 = smov [#allocation4]  }
   0x6   : > { %s275_s15 = sshll.u32 %s1393_s14, 4  ;;  %s1335_s17 = scalar_lea.vmem %s262_s12, 384  ;;  %s276_s15 = int_to_ptr.vmem [resolvable:$true] %s275_s15 }
   0x7   : > { %p1272_p4 = pneg %p1459_p2  ;;  %p1336_p7 = scmp.ne.s32.totalorder %s262_s12, %s1335_s17 }
   0x8   : > { %p1343_p10 = scmp.lt.s32.totalorder %s262_s12, %s262_s12  ;;  %p1344_p11 = scmp.lt.s32.totalorder %s1335_s17, %s1335_s17 }
   0x9   : > { %p1468_p5 = pnand %p1279_p3, %p1272_p4 }
   0xa   : > { %p1345_p12 = por %p1344_p11, %p1343_p10 }
   0xb   : > { %p1326_p6 = pneg %p1468_p5 }
   0xd   : > { %p1338_p8 = pnand %p1336_p7, %p1326_p6 }
   0xf   : > { %p1339_p9 = pneg %p1338_p8 }
  0x11   : > { %p1346_p13 = pnand %p1345_p12, %p1339_p9 }
  0x13   : > { %1349 = shalt.err (!%p1346_p13)
}
  0x14   : > { %s1394_s18 = smov 128   ;;  %s1395_s19 = smov 8  }
  0x15   : > { %1275 = dma.hbm_to_vmem [thread:$0]  (!%p1468_p5), %s1696_s2, 384, %s262_s12, [#allocation3], %s1394_s18, %s1394_s18, %s1395_s19  }
  0x16   : > { %s1361_s22 = scalar_lea.vmem %s276_s15, 16  ;;  %s1368_s23 = scalar_lea.vmem %s276_s15, 32 }
  0x17   : > { %p1362_p0 = scmp.ne.s32.totalorder %s276_s15, %s1361_s22  ;;  %p1369_p7 = scmp.lt.s32.totalorder %s276_s15, %s276_s15 }
  0x18   : > { %p1370_p8 = scmp.lt.s32.totalorder %s1368_s23, %s1361_s22 }
  0x19   : > { %p1364_p1 = pnand %p1362_p0, %p1326_p6 }
  0x1a   : > { %p1371_p9 = por %p1370_p8, %p1369_p7 }
  0x1b   : > { %p1365_p4 = pneg %p1364_p1 }
  0x1d   : > { %p1372_p10 = pnand %p1371_p9, %p1365_p4 }
  0x1f   : > { %1375 = shalt.err (!%p1372_p10)
}
  0x20   : > { %1278 = dma.hbm_to_vmem [thread:$0]  (!%p1468_p5), %s1697_s3, 16, %s276_s15, [#allocation5]  }
  0x21   : > { %311 = sbr.rel (%p1459_p2) target bundleno = 1159 (0x487), region = 56 }
  0x26   : > { %1381 = dma.done.wait (%p1279_p3), [#allocation3], 384  }
  0x27   : > { %1383 = vsyncadd (%p1279_p3), [#allocation3], 4294966912 }
  0x28   : > { %1385 = dma.done.wait (%p1279_p3), [#allocation5], 16  }
  0x29   : > { %1387 = vsyncadd (%p1279_p3), [#allocation5], 4294967280  ;;  %p351_p6 = scmp.lt.s32.totalorder %s1455_s10, 1  ;;  %v1396_v0 = vmov 0.0   ;;  %vm1397_vm0 = vmmov 0   ;;  %v364_v1 = vld [vmem:[%s1695_s1 + $0x18] sm:$0xff] }
  0x2a   : > { %1176 = vmatprep.subr.mxu0 %v1396_v0  ;;  %1184 = vmatprep.mubr.msk.f32.mxu0 %vm1397_vm0, %v1396_v0  ;;  %v363_v2 = vld [vmem:[%s1695_s1 + $0x10] sm:$0xff]  ;;  %v362_v3 = vld [vmem:[%s1695_s1 + $0x8] sm:$0xff]  ;;  %v361_v4 = vld [vmem:[%s1695_s1] sm:$0xff]  ;;  %vm387_vm1 = vcmask 261120   ;;  %vm493_vm2 = vcmask 1043456   ;;  %vm483_vm3 = vcmask 162816  }
  0x2b   : > { %s1707_s10 = smov (!%p351_p6, %s1455_s10), 1  ;;  %1257 = vmatprep.subr.mxu1 %v1396_v0  ;;  %1202 = vmatprep.mubr.msk.f32.mxu1 %vm1397_vm0, %v1396_v0  ;;  %v365_v14 = vld [vmem:[#allocation2] sm:$0xff]  ;;  %v366_v15 = vld [vmem:[#allocation2 + $0x8] sm:$0xff]  ;;  %v367_v16 = vld [vmem:[#allocation2 + $0x10] sm:$0xf]  ;;  %vm1032_vm10 = vcmask 257024  }
  0x2c   : > { %s1263_s26 = smul.u32 24, %s1707_s10  ;;  %1177 = vmatpush3.msra.mxu0 %v364_v1  ;;  %v375_v17 = vld [vmem:[%s1699_s5 + $0x18] sm:$0xff]  ;;  %v374_v18 = vld [vmem:[%s1699_s5 + $0x10] sm:$0xff]  ;;  %v373_v19 = vld [vmem:[%s1699_s5 + $0x8] sm:$0xff] }
  0x2d   : > { %1178 = vmatprep.subr.mxu0 %v1396_v0  ;;  %v372_v20 = vld [vmem:[%s1699_s5] sm:$0xff]  ;;  %v1125_v21 = vld [vmem:[#allocation4] ss:$0 sm:$0xff] }
  0x2e   : > { %s355_s16 = scalar_lea.vmem %s1694_s0, %s1263_s26  ;;  %1179 = vmatpush3.msra.mxu0 %v363_v2  ;;  %s360_s15 = scalar_lea.vmem %s1703_s9, %s1263_s26 }
  0x2f   : > { %1180 = vmatprep.subr.mxu0 %v1396_v0  ;;  %v384_v5 = vld [vmem:[%s355_s16] sm:$0xff]  ;;  %v385_v6 = vld [vmem:[%s355_s16 + $0x8] sm:$0xff]  ;;  %v386_v7 = vld [vmem:[%s355_s16 + $0x10] sm:$0xf] }
  0x30   : > { %1181 = vmatpush3.msra.mxu0 %v362_v3 }
  0x31   : > { %1182 = vmatprep.subr.mxu0 %v1396_v0 }
  0x32   : > { %1183 = vmatpush3.msra.mxu0 %v361_v4 }
  0x33   : > { %1185 = vmatmul.mubr.msk.f32.vlgmr.msra.gmra.mxu0 %vm387_vm1, %v384_v5  ;;  %1193 = vmatprep.subr.mxu0 %v1396_v0 }
  0x34   : > { %1187 = vmatprep.mubr.msk.f32.mxu0 %vm1397_vm0, %v1396_v0 }
  0x37   : > { %1188 = vmatmul.mubr.msk.f32.gmra.mxu0 %vm387_vm1, %v385_v6 }
  0x38   : > { %1190 = vmatprep.mubr.msk.f32.mxu0 %vm1397_vm0, %v1396_v0 }
  0x3b   : > { %1191 = vmatmul.mubr.msk.f32.gmra.mxu0 %vm387_vm1, %v386_v7 }
  0x3c   : > { %1199 = vmatprep.mubr.msk.f32.mxu0 %vm1397_vm0, %v1396_v0 }
  0xf3   : > { %v463_v8 = vpop.f32.mrf.mxu0 }
  0xf5   : > { %v1186_v9 = vpop.f32.mrf.mxu0 }
  0xf7   : > { %v468_v10 = vpop.f32.mrf.mxu0 }
  0xf9   : > { %v1189_v11 = vpop.f32.mrf.mxu0 }
  0xfb   : > { %v473_v12 = vpop.f32.mrf.mxu0 }
  0xfc   : > { %1194 = vmatpush3.msk.msra.mxu0 %vm493_vm2, %v473_v12  ;;  %1260 = vmatpush3.msk.msra.mxu1 %vm493_vm2, %v473_v12 }
  0xfd   : > { %v1192_v13 = vpop.f32.mrf.mxu0  ;;  %1195 = vmatprep.subr.mxu0 %v1396_v0  ;;  %1258 = vmatprep.subr.mxu1 %v1396_v0 }
  0xfe   : > { %1196 = vmatpush3.msra.mxu0 %v468_v10  ;;  %1261 = vmatpush3.msra.mxu1 %v468_v10 }
  0xff   : > { %1197 = vmatprep.subr.mxu0 %v1396_v0  ;;  %1259 = vmatprep.subr.mxu1 %v1396_v0 }
 0x100   : > { %1198 = vmatpush3.msra.mxu0 %v463_v8  ;;  %1262 = vmatpush3.msra.mxu1 %v463_v8 }
 0x101   : > { %1200 = vmatmul.mubr.msk.f32.vlgmr.msra.gmra.mxu0 %vm483_vm3, %v365_v14  ;;  %1203 = vmatmul.mubr.msk.f32.vlgmr.msra.gmra.mxu1 %vm483_vm3, %v366_v15 }
 0x102   : > { %1205 = vmatprep.mubr.msk.f32.mxu1 %vm1397_vm0, %v1396_v0  ;;  %1208 = vmatprep.subr.mxu1 %v1396_v0 }
 0x103   : > { %1225 = vmatprep.subr.mxu0 %v1396_v0  ;;  %1231 = vmatprep.mubr.msk.f32.mxu0 %vm1397_vm0, %v1396_v0 }
 0x104   : > { %1209 = vmatpush3.msra.mxu1 %v375_v17 }
 0x105   : > { %1206 = vmatmul.mubr.msk.f32.gmra.mxu1 %vm483_vm3, %v367_v16  ;;  %1210 = vmatprep.subr.mxu1 %v1396_v0 }
 0x106   : > { %1216 = vmatprep.mubr.msk.f32.mxu1 %vm1397_vm0, %v1396_v0  ;;  %1211 = vmatpush3.msra.mxu1 %v374_v18 }
 0x107   : > { %1212 = vmatprep.subr.mxu1 %v1396_v0 }
 0x108   : > { %1213 = vmatpush3.msra.mxu1 %v373_v19 }
 0x109   : > { %1214 = vmatprep.subr.mxu1 %v1396_v0 }
 0x10a   : > { %1215 = vmatpush3.msra.mxu1 %v372_v20 }
 0x10b   : > { %1240 = vmatprep.subr.mxu1 %v1396_v0 }
 0x1c1   : > { %v563_v22 = vpop.f32.mrf.mxu0  ;;  %v568_v23 = vpop.f32.mrf.mxu1 }
 0x1c2   : > { %v1574_v24 = vadd.f32 %v1125_v21, %v563_v22  ;;  %v1576_v25 = vadd.f32 %v1125_v21, %v568_v23 }
 0x1c3   : > { %v1204_v26 = vpop.f32.mrf.mxu1  ;;  %v1201_v27 = vpop.f32.mrf.mxu0 }
 0x1c4   : > { %v1579_v28 = vmul.f32 0.70710677, %v1574_v24  ;;  %v1582_v29 = vmul.f32 0.70710677, %v1576_v25 }
 0x1c5   : > { %v573_v30 = vpop.f32.mrf.mxu1 }
 0x1c6   : > { %v583_v31 = vand.u32 2147483647, %v1579_v28  ;;  %v584_v32 = vand.u32 2147483647, %v1582_v29  ;;  %v1586_v33 = vadd.f32 %v1125_v21, %v573_v30  ;;  %vm643_vm4 = vcmp.lt.f32.partialorder %v1579_v28, 0.0 }
 0x1c7   : > { %v1207_v34 = vpop.f32.mrf.mxu1  ;;  %vm644_vm5 = vcmp.lt.f32.partialorder %v1582_v29, 0.0 }
 0x1c8   : > { %v586_v35 = vmul.f32 0.3275911, %v583_v31  ;;  %v587_v36 = vmul.f32 0.3275911, %v584_v32  ;;  %v1589_v37 = vmul.f32 0.70710677, %v1586_v33 }
 0x1c9   : > { %v625_v43 = vsub.f32 0.0, %v583_v31  ;;  %v626_v44 = vsub.f32 0.0, %v584_v32 }
 0x1ca   : > { %v589_v38 = vadd.f32 1.0, %v586_v35  ;;  %v590_v39 = vadd.f32 1.0, %v587_v36  ;;  %v585_v40 = vand.u32 2147483647, %v1589_v37  ;;  %v577_v35 = vmul.f32 0.5, %v1574_v24 }
 0x1cb   : > { %v628_v45 = vmul.f32 %v625_v43, %v583_v31  ;;  %v629_v46 = vmul.f32 %v626_v44, %v584_v32  ;;  %vm645_vm6 = vcmp.lt.f32.partialorder %v1589_v37, 0.0  ;;  %v578_v43 = vmul.f32 0.5, %v1576_v25  ;;  %v376_v25 = vld [vmem:[%s1700_s6] sm:$0xff]  ;;  %v378_v37 = vld [vmem:[%s1700_s6 + $0x10] sm:$0xf] }
 0x1cc   : > { %1300 = vrcp.f32 %v589_v38  ;;  %v588_v41 = vmul.f32 0.3275911, %v585_v40  ;;  %v627_v47 = vsub.f32 0.0, %v585_v40  ;;  %v579_v24 = vmul.f32 0.5, %v1586_v33 }
 0x1cd   : > { %1302 = vrcp.f32 %v590_v39  ;;  %v631_v51 = vmul.f32 1.442695, %v628_v45  ;;  %v633_v53 = vmul.f32 1.442695, %v629_v46  ;;  %v1398_v33 = vmov 0   ;;  %v377_v46 = vld [vmem:[%s1700_s6 + $0x8] sm:$0xff] }
 0x1ce   : > { %v591_v42 = vadd.f32 1.0, %v588_v41  ;;  %v630_v54 = vmul.f32 %v627_v47, %v585_v40  ;;  %1298 = vset.pattern.permute.xlu0 %v1398_v33  ;;  %1299 = vset.pattern.permute.xlu1 %v1398_v33 }
 0x1cf   : > { %749 = vperm.xlu0 %1298, %v376_v25   ;;  %759 = vperm.xlu1 %1299, %v378_v37  }
 0x1d0   : > { %1304 = vrcp.f32 %v591_v42  ;;  %v635_v61 = vmul.f32 1.442695, %v630_v54  ;;  %v370_v54 = vld [vmem:[%s1698_s4 + $0x8] sm:$0xff] }
 0x1d1   : > { %1306 = vpow2.f32 %v631_v51 }
 0x1d2   : > { %1308 = vpow2.f32 %v633_v53  ;;  %v369_v53 = vld [vmem:[%s1698_s4] sm:$0xff] }
 0x1d3   : > { %1310 = vpow2.f32 %v635_v61  ;;  %754 = vperm.xlu0 %1298, %v377_v46  }
 0x1d9   : > { %v1301_v48 = vpop.eup %1300 }
 0x1da   : > { %v1303_v49 = vpop.eup %1302  ;;  %v598_v50 = vmul.f32 1.0614054, %v1301_v48 }
 0x1db   : > { %v599_v52 = vmul.f32 1.0614054, %v1303_v49 }
 0x1dc   : > { %v601_v55 = vadd.f32 -1.4531521, %v598_v50 }
 0x1dd   : > { %v602_v56 = vadd.f32 -1.4531521, %v599_v52  ;;  %v1305_v57 = vpop.eup %1304 }
 0x1de   : > { %v604_v58 = vmul.f32 %v1301_v48, %v601_v55  ;;  %v600_v60 = vmul.f32 1.0614054, %v1305_v57  ;;  %v1307_v15 = vpop.eup %1306  ;;  %v371_v55 = vld [vmem:[%s1698_s4 + $0x10] sm:$0xf] }
 0x1df   : > { %v605_v59 = vmul.f32 %v1303_v49, %v602_v56  ;;  %v1309_v18 = vpop.eup %1308  ;;  %v382_v56 = vld [vmem:[%s1701_s7 + $0x18] sm:$0xff] }
 0x1e0   : > { %v607_v62 = vadd.f32 1.4214138, %v604_v58  ;;  %v603_v1 = vadd.f32 -1.4531521, %v600_v60  ;;  %v1311_v27 = vpop.eup %1310  ;;  %v380_v58 = vld [vmem:[%s1701_s7 + $0x8] sm:$0xff] }
 0x1e1   : > { %v608_v63 = vadd.f32 1.4214138, %v605_v59  ;;  %v379_v59 = vld [vmem:[%s1701_s7] sm:$0xff] }
 0x1e2   : > { %v610_v2 = vmul.f32 %v1301_v48, %v607_v62  ;;  %v606_v4 = vmul.f32 %v1305_v57, %v603_v1 }
 0x1e3   : > { %v611_v3 = vmul.f32 %v1303_v49, %v608_v63 }
 0x1e4   : > { %v613_v5 = vadd.f32 -0.28449672, %v610_v2  ;;  %v609_v7 = vadd.f32 1.4214138, %v606_v4 }
 0x1e5   : > { %v614_v6 = vadd.f32 -0.28449672, %v611_v3 }
 0x1e6   : > { %v616_v8 = vmul.f32 %v1301_v48, %v613_v5  ;;  %v612_v10 = vmul.f32 %v1305_v57, %v609_v7 }
 0x1e7   : > { %v617_v9 = vmul.f32 %v1303_v49, %v614_v6 }
 0x1e8   : > { %v619_v11 = vadd.f32 0.2548296, %v616_v8  ;;  %v615_v13 = vadd.f32 -0.28449672, %v612_v10 }
 0x1e9   : > { %v620_v12 = vadd.f32 0.2548296, %v617_v9 }
 0x1ea   : > { %v622_v14 = vmul.f32 %v1301_v48, %v619_v11  ;;  %v618_v17 = vmul.f32 %v1305_v57, %v615_v13 }
 0x1eb   : > { %v623_v16 = vmul.f32 %v1303_v49, %v620_v12 }
 0x1ec   : > { %v637_v19 = vmul.f32 %v1307_v15, %v622_v14  ;;  %v621_v21 = vadd.f32 0.2548296, %v618_v17 }
 0x1ed   : > { %v638_v20 = vmul.f32 %v1309_v18, %v623_v16 }
 0x1ee   : > { %v640_v22 = vsub.f32 1.0, %v637_v19  ;;  %v624_v26 = vmul.f32 %v1305_v57, %v621_v21  ;;  %v381_v57 = vld [vmem:[%s1701_s7 + $0x10] sm:$0xff] }
 0x1ef   : > { %v641_v23 = vsub.f32 1.0, %v638_v20 }
 0x1f0   : > { %v646_v30 = vsub.f32 0.0, %v640_v22  ;;  %v639_v32 = vmul.f32 %v1311_v27, %v624_v26 }
 0x1f1   : > { %v647_v31 = vsub.f32 0.0, %v641_v23 }
 0x1f2   : > { %v649_v34 = vsel %vm643_vm4, %v646_v30, %v640_v22  ;;  %v642_v39 = vsub.f32 1.0, %v639_v32 }
 0x1f3   : > { %v652_v36 = vadd.f32 1.0, %v649_v34  ;;  %v650_v38 = vsel %vm644_vm5, %v647_v31, %v641_v23 }
 0x1f4   : > { %v653_v41 = vadd.f32 1.0, %v650_v38  ;;  %v648_v42 = vsub.f32 0.0, %v642_v39 }
 0x1f5   : > { %v655_v40 = vmul.f32 %v652_v36, %v577_v35 }
 0x1f6   : > { %v651_v44 = vsel %vm645_vm6, %v648_v42, %v642_v39  ;;  %v656_v28 = vmul.f32 %v653_v41, %v578_v43 }
 0x1f7   : > { %1217 = vmatmul.mubr.msk.f32.vlgmr.msra.gmra.mxu1 %vm387_vm1, %v655_v40  ;;  %v654_v29 = vadd.f32 1.0, %v651_v44 }
 0x1f8   : > { %1219 = vmatprep.mubr.msk.f32.mxu1 %vm1397_vm0, %v1396_v0  ;;  %1241 = vmatpush3.msra.mxu1 %v382_v56 }
 0x1f9   : > { %v657_v45 = vmul.f32 %v654_v29, %v579_v24  ;;  %1242 = vmatprep.subr.mxu1 %v1396_v0 }
 0x1fa   : > { %1243 = vmatpush3.msra.mxu1 %v381_v57 }
 0x1fb   : > { %1220 = vmatmul.mubr.msk.f32.gmra.mxu1 %vm387_vm1, %v656_v28  ;;  %1244 = vmatprep.subr.mxu1 %v1396_v0 }
 0x1fc   : > { %1222 = vmatprep.mubr.msk.f32.mxu1 %vm1397_vm0, %v1396_v0  ;;  %1245 = vmatpush3.msra.mxu1 %v380_v58 }
 0x1fd   : > { %1246 = vmatprep.subr.mxu1 %v1396_v0 }
 0x1fe   : > { %1247 = vmatpush3.msra.mxu1 %v379_v59 }
 0x1ff   : > { %1223 = vmatmul.mubr.msk.f32.gmra.mxu1 %vm387_vm1, %v657_v45 }
 0x200   : > { %1248 = vmatprep.mubr.msk.f32.mxu1 %vm1397_vm0, %v1396_v0 }
 0x24a   : > { %v750_v60 = vpop.permute.xlu0 %749  ;;  %v760_v9 = vpop.permute.xlu1 %759 }
 0x24e   : > { %v755_v2 = vpop.permute.xlu0 %754 }
 0x2b7   : > { %v733_v47 = vpop.f32.mrf.mxu1 }
 0x2b9   : > { %v1218_v48 = vpop.f32.mrf.mxu1 }
 0x2bb   : > { %v738_v49 = vpop.f32.mrf.mxu1 }
 0x2bd   : > { %v1221_v50 = vpop.f32.mrf.mxu1 }
 0x2bf   : > { %v743_v51 = vpop.f32.mrf.mxu1 }
 0x2c0   : > { %1226 = vmatpush3.msk.msra.mxu0 %vm493_vm2, %v743_v51 }
 0x2c1   : > { %v1224_v52 = vpop.f32.mrf.mxu1  ;;  %1227 = vmatprep.subr.mxu0 %v1396_v0 }
 0x2c2   : > { %1228 = vmatpush3.msra.mxu0 %v738_v49 }
 0x2c3   : > { %1229 = vmatprep.subr.mxu0 %v1396_v0 }
 0x2c4   : > { %1230 = vmatpush3.msra.mxu0 %v733_v47 }
 0x2c5   : > { %1232 = vmatmul.mubr.msk.f32.vlgmr.msra.gmra.mxu0 %vm483_vm3, %v369_v53 }
 0x2c6   : > { %1234 = vmatprep.mubr.msk.f32.mxu0 %vm1397_vm0, %v1396_v0 }
 0x2c9   : > { %1235 = vmatmul.mubr.msk.f32.gmra.mxu0 %vm483_vm3, %v370_v54 }
 0x2ca   : > { %1237 = vmatprep.mubr.msk.f32.mxu0 %vm1397_vm0, %v1396_v0 }
 0x2cd   : > { %1238 = vmatmul.mubr.msk.f32.gmra.mxu0 %vm483_vm3, %v371_v55 }
 0x385   : > { %v840_v61 = vpop.f32.mrf.mxu0 }
 0x386   : > { %v1650_v62 = vadd.f32 %v840_v61, %v750_v60 }
 0x387   : > { %v1233_v63 = vpop.f32.mrf.mxu0 }
 0x388   : > { %v1653_v1 = vmul.f32 0.70710677, %v1650_v62 }
 0x389   : > { %v845_v3 = vpop.f32.mrf.mxu0 }
 0x38a   : > { %v860_v4 = vand.u32 2147483647, %v1653_v1  ;;  %v1656_v5 = vadd.f32 %v845_v3, %v755_v2  ;;  %vm920_vm7 = vcmp.lt.f32.partialorder %v1653_v1, 0.0 }
 0x38b   : > { %v1236_v6 = vpop.f32.mrf.mxu0 }
 0x38c   : > { %v863_v7 = vmul.f32 0.3275911, %v860_v4  ;;  %v1659_v8 = vmul.f32 0.70710677, %v1656_v5  ;;  %v902_v20 = vsub.f32 0.0, %v860_v4 }
 0x38d   : > { %v850_v10 = vpop.f32.mrf.mxu0 }
 0x38e   : > { %v866_v11 = vadd.f32 1.0, %v863_v7  ;;  %v861_v12 = vand.u32 2147483647, %v1659_v8  ;;  %v1662_v13 = vadd.f32 %v850_v10, %v760_v9  ;;  %v905_v22 = vmul.f32 %v902_v20, %v860_v4 }
 0x38f   : > { %v1239_v14 = vpop.f32.mrf.mxu0  ;;  %v854_v7 = vmul.f32 0.5, %v1650_v62  ;;  %vm921_vm8 = vcmp.lt.f32.partialorder %v1659_v8, 0.0 }
 0x390   : > { %1312 = vrcp.f32 %v866_v11  ;;  %v864_v15 = vmul.f32 0.3275911, %v861_v12  ;;  %v1665_v16 = vmul.f32 0.70710677, %v1662_v13  ;;  %v903_v23 = vsub.f32 0.0, %v861_v12 }
 0x391   : > { %v908_v30 = vmul.f32 1.442695, %v905_v22  ;;  %v856_v8 = vmul.f32 0.5, %v1662_v13 }
 0x392   : > { %v867_v17 = vadd.f32 1.0, %v864_v15  ;;  %v862_v18 = vand.u32 2147483647, %v1665_v16  ;;  %v906_v31 = vmul.f32 %v903_v23, %v861_v12  ;;  %vm922_vm9 = vcmp.lt.f32.partialorder %v1665_v16, 0.0  ;;  %v1137_v23 = vld [vmem:[%s1702_s8] ss:$0 sm:$0xff] }
 0x394   : > { %1314 = vrcp.f32 %v867_v17  ;;  %v865_v19 = vmul.f32 0.3275911, %v862_v18  ;;  %v904_v32 = vsub.f32 0.0, %v862_v18  ;;  %v910_v39 = vmul.f32 1.442695, %v906_v31 }
 0x396   : > { %v868_v21 = vadd.f32 1.0, %v865_v19  ;;  %v907_v40 = vmul.f32 %v904_v32, %v862_v18  ;;  %v855_v18 = vmul.f32 0.5, %v1656_v5 }
 0x398   : > { %1316 = vrcp.f32 %v868_v21  ;;  %v912_v24 = vmul.f32 1.442695, %v907_v40 }
 0x399   : > { %1318 = vpow2.f32 %v908_v30 }
 0x39a   : > { %1320 = vpow2.f32 %v910_v39 }
 0x39b   : > { %1322 = vpow2.f32 %v912_v24 }
 0x39d   : > { %v1313_v26 = vpop.eup %1312 }
 0x39e   : > { %v875_v27 = vmul.f32 1.0614054, %v1313_v26 }
 0x3a0   : > { %v878_v34 = vadd.f32 -1.4531521, %v875_v27 }
 0x3a1   : > { %v1315_v35 = vpop.eup %1314 }
 0x3a2   : > { %v881_v36 = vmul.f32 %v1313_v26, %v878_v34  ;;  %v876_v38 = vmul.f32 1.0614054, %v1315_v35 }
 0x3a4   : > { %v884_v41 = vadd.f32 1.4214138, %v881_v36  ;;  %v879_v42 = vadd.f32 -1.4531521, %v876_v38 }
 0x3a5   : > { %v1317_v43 = vpop.eup %1316 }
 0x3a6   : > { %v887_v44 = vmul.f32 %v1313_v26, %v884_v41  ;;  %v882_v28 = vmul.f32 %v1315_v35, %v879_v42  ;;  %v877_v29 = vmul.f32 1.0614054, %v1317_v43  ;;  %v1319_v53 = vpop.eup %1318 }
 0x3a7   : > { %v1321_v60 = vpop.eup %1320 }
 0x3a8   : > { %v890_v45 = vadd.f32 -0.28449672, %v887_v44  ;;  %v885_v25 = vadd.f32 1.4214138, %v882_v28  ;;  %v880_v37 = vadd.f32 -1.4531521, %v877_v29  ;;  %v1323_v11 = vpop.eup %1322 }
 0x3aa   : > { %v893_v33 = vmul.f32 %v1313_v26, %v890_v45  ;;  %v888_v46 = vmul.f32 %v1315_v35, %v885_v25  ;;  %v883_v47 = vmul.f32 %v1317_v43, %v880_v37 }
 0x3ac   : > { %v896_v48 = vadd.f32 0.2548296, %v893_v33  ;;  %v891_v49 = vadd.f32 -0.28449672, %v888_v46  ;;  %v886_v50 = vadd.f32 1.4214138, %v883_v47 }
 0x3ae   : > { %v899_v51 = vmul.f32 %v1313_v26, %v896_v48  ;;  %v894_v52 = vmul.f32 %v1315_v35, %v891_v49  ;;  %v889_v54 = vmul.f32 %v1317_v43, %v886_v50 }
 0x3b0   : > { %v914_v55 = vmul.f32 %v1319_v53, %v899_v51  ;;  %v897_v56 = vadd.f32 0.2548296, %v894_v52  ;;  %v892_v57 = vadd.f32 -0.28449672, %v889_v54 }
 0x3b2   : > { %v917_v58 = vsub.f32 1.0, %v914_v55  ;;  %v900_v59 = vmul.f32 %v1315_v35, %v897_v56  ;;  %v895_v61 = vmul.f32 %v1317_v43, %v892_v57 }
 0x3b4   : > { %v923_v63 = vsub.f32 0.0, %v917_v58  ;;  %v915_v2 = vmul.f32 %v1321_v60, %v900_v59  ;;  %v898_v3 = vadd.f32 0.2548296, %v895_v61 }
 0x3b6   : > { %v926_v4 = vsel %vm920_vm7, %v923_v63, %v917_v58  ;;  %v918_v6 = vsub.f32 1.0, %v915_v2  ;;  %v901_v10 = vmul.f32 %v1317_v43, %v898_v3 }
 0x3b7   : > { %v929_v9 = vadd.f32 1.0, %v926_v4 }
 0x3b8   : > { %v924_v12 = vsub.f32 0.0, %v918_v6  ;;  %v916_v15 = vmul.f32 %v1323_v11, %v901_v10 }
 0x3b9   : > { %v932_v14 = vmul.f32 %v929_v9, %v854_v7 }
 0x3ba   : > { %v927_v17 = vsel %vm921_vm8, %v924_v12, %v918_v6  ;;  %v919_v20 = vsub.f32 1.0, %v916_v15 }
 0x3bb   : > { %v930_v19 = vadd.f32 1.0, %v927_v17  ;;  %1249 = vmatmul.mubr.msk.f32.vlgmr.msra.gmra.mxu1 %vm387_vm1, %v932_v14 }
 0x3bc   : > { %1251 = vmatprep.mubr.msk.f32.mxu1 %vm1397_vm0, %v1396_v0  ;;  %v925_v1 = vsub.f32 0.0, %v919_v20 }
 0x3bd   : > { %v933_v62 = vmul.f32 %v930_v19, %v855_v18 }
 0x3be   : > { %v928_v21 = vsel %vm922_vm9, %v925_v1, %v919_v20 }
 0x3bf   : > { %1252 = vmatmul.mubr.msk.f32.gmra.mxu1 %vm387_vm1, %v933_v62  ;;  %v931_v22 = vadd.f32 1.0, %v928_v21 }
 0x3c0   : > { %1254 = vmatprep.mubr.msk.f32.mxu1 %vm1397_vm0, %v1396_v0 }
 0x3c1   : > { %v934_v5 = vmul.f32 %v931_v22, %v856_v8 }
 0x3c3   : > { %1255 = vmatmul.mubr.msk.f32.gmra.mxu1 %vm387_vm1, %v934_v5 }
 0x47b   : > { %v1016_v16 = vpop.f32.mrf.mxu1 }
 0x47c   : > { %v1017_v26 = vadd.f32 %v1137_v23, %v1016_v16 }
 0x47d   : > { %v1250_v27 = vpop.f32.mrf.mxu1 }
 0x47e   : > { %1030 = vst.msk [vmem:[%s360_s15] sm:$0xff] %vm387_vm1, %v1017_v26 }
 0x47f   : > { %v1021_v13 = vpop.f32.mrf.mxu1 }
 0x480   : > { %v1022_v30 = vadd.f32 %v1137_v23, %v1021_v13 }
 0x481   : > { %v1253_v0 = vpop.f32.mrf.mxu1 }
 0x482   : > { %1031 = vst.msk [vmem:[%s360_s15 + $0x8] sm:$0xff] %vm387_vm1, %v1022_v30 }
 0x483   : > { %v1026_v31 = vpop.f32.mrf.mxu1 }
 0x484   : > { %v1027_v32 = vadd.f32 %v1137_v23, %v1026_v31 }
 0x485   : > { %v1256_v34 = vpop.f32.mrf.mxu1 }
 0x486   : > { %1033 = vst.msk [vmem:[%s360_s15 + $0x10] sm:$0xf] %vm1032_vm10, %v1027_v32 }
 0x487 PF: > { %s21_s30 = sadd.s32 1, %s1390_s30  }
 0x488   : > { %p18_p2 = scmp.ge.s32.totalorder %s21_s30, 4  }
 0x48a   :  { %20 = sbr.rel (!%p18_p2) target bundleno = 2 (0x2), region = 95 }
 0x48f   :  { %1055 = vsyncpa [#allocation3], 1 }
 0x490   :  { %1057 = vsyncpa [#allocation3 + $0x1], 1 }
 0x491   :  { %1058 = vsyncpa [#allocation5], 1 }

</bundles_post_ra>
